<compile_context>
chip_gen: v7x
topology: tpu7x:2x2x1
jax: 0.10.0
libtpu: 0.0.40
codegen_flags: <defaults>
</compile_context>

<pallas_src>
import functools

import jax
import jax.numpy as jnp
from jax.experimental import pallas as pl
from jax.experimental.pallas import tpu as pltpu


def _round_up(x, m):
    return ((x + m - 1) // m) * m


def _wqe_kernel(q_ref, embT_ref, out_ref, *, num_embeddings, use_softmax):
    # q_ref:    (1, BM)   quantiles, batch on the lane axis
    # embT_ref: (D, E)    transposed embedding table (VMEM-resident, same
    #                     block every grid step -> fetched once)
    # out_ref:  (D, BM)   transposed output tile (lane-dense store)
    E = num_embeddings
    q = q_ref[...]                                   # (1, BM)
    bm = q.shape[-1]

    # quantile_indexes = linspace(0, 1, E), generated in-kernel, E on sublanes.
    scale = 1.0 / (E - 1) if E > 1 else 0.0
    idx = jax.lax.broadcasted_iota(jnp.int32, (E, bm), 0).astype(jnp.float32)
    idx = idx * scale                                # (E, BM)

    # Inverse-distance logits.  Keep this reciprocal exact: it can reach ~1e8
    # and determines the (near-)one-hot winner.
    diff = jnp.abs(idx - q)                          # (E, BM) broadcast over sublanes
    w = 1.0 / (diff + 1e-8)

    if use_softmax:
        w_max = jnp.max(w, axis=0, keepdims=True)    # (1, BM) sublane reduce (XLU)
        e = jnp.exp(w - w_max)                       # EUP
        denom = jnp.sum(e, axis=0, keepdims=True)    # (1, BM)
        w_n = e * pl.reciprocal(denom, approx=True)  # EUP vrcp, off the VALU path
    else:
        denom = jnp.sum(w, axis=0, keepdims=True)
        w_n = w / denom                              # exact (denom can be ~1e8)

    # Mixture on the MXU: (D, E) @ (E, BM) -> (D, BM); store stays lane-dense.
    out_ref[...] = jnp.dot(
        embT_ref[...], w_n, preferred_element_type=jnp.float32
    ).astype(out_ref.dtype)


def weighted_quantile_embedding(quantiles, emb_weight, *, use_softmax=True,
                                block_b=2048):
    """quantiles: (B, 1); emb_weight: (E, D).  Returns (B, D) float32."""
    B = quantiles.shape[0]
    E, D = emb_weight.shape

    # Batch tile: multiple of 128 (lane-dense), capped at block_b.
    BM = min(block_b, _round_up(max(B, 1), 128))
    B_pad = _round_up(B, BM)
    grid = (B_pad // BM,)

    # Batch on the lane axis, padded to the tile boundary (padded rows compute
    # harmlessly on quantile=0 and are sliced off below).
    q_row = quantiles.reshape(1, B).astype(jnp.float32)
    q_row = jnp.pad(q_row, ((0, 0), (0, B_pad - B)))

    emb_T = emb_weight.astype(jnp.float32).T         # (D, E)

    kernel = functools.partial(
        _wqe_kernel, num_embeddings=E, use_softmax=use_softmax)

    out_T = pl.pallas_call(
        kernel,
        out_shape=jax.ShapeDtypeStruct((D, B_pad), jnp.float32),
        grid_spec=pltpu.PrefetchScalarGridSpec(
            num_scalar_prefetch=0,
            grid=grid,
            in_specs=[
                pl.BlockSpec((1, BM), lambda i: (0, i)),   # quantile row tile
                pl.BlockSpec((D, E), lambda i: (0, 0)),    # emb table, resident
            ],
            out_specs=pl.BlockSpec((D, BM), lambda i: (0, i)),
        ),
        compiler_params=pltpu.CompilerParams(
            dimension_semantics=("parallel",)),            # megacore split on v7x
    )(q_row, emb_T)

    # Back to the module's (batch, state_dims) layout.
    return out_T[:, :B].T


def reference(quantiles, emb_weight, use_softmax=True):
    E = emb_weight.shape[0]
    idx = jnp.linspace(0.0, 1.0, E, dtype=jnp.float32)
    w = 1.0 / (jnp.abs(quantiles - idx[None, :]) + 1e-8)
    if use_softmax:
        w = jax.nn.softmax(w, axis=-1)
    else:
        w = w / jnp.sum(w, axis=-1, keepdims=True)
    return w @ emb_weight


if __name__ == "__main__":
    key = jax.random.PRNGKey(0)
    k_q, k_e = jax.random.split(key)

    batch = 2
    num_embeddings = 20
    state_dims = 32

    # Deterministic parameter init (nn.Embedding default ~ N(0, 1)).
    emb_weight = jax.random.normal(k_e, (num_embeddings, state_dims),
                                   dtype=jnp.float32)
    # Input quantiles in [0, 1), shape (batch, 1).
    quantiles = jax.random.uniform(k_q, (batch, 1), dtype=jnp.float32)

    out = weighted_quantile_embedding(quantiles, emb_weight, use_softmax=True)
    out = jax.block_until_ready(out)
    ref = reference(quantiles, emb_weight, use_softmax=True)
    assert out.shape == (batch, state_dims)
    # 2e-3 tolerance: the softmax denominator uses the ~2^-12-accurate EUP
    # approx reciprocal (per perf guidance); everything else is exact f32.
    assert jnp.allclose(out, ref, atol=2e-3, rtol=2e-3), (out, ref)

    # Also exercise the use_softmax=False (sum-normalisation) branch.
    out2 = jax.block_until_ready(
        weighted_quantile_embedding(quantiles, emb_weight, use_softmax=False))
    ref2 = reference(quantiles, emb_weight, use_softmax=False)
    assert jnp.allclose(out2, ref2, atol=2e-3, rtol=2e-3), (out2, ref2)

    print("KERNEL_OK")
</pallas_src>

<mosaic_0001>
module attributes {stable_mosaic.version = 11 : i64} {
  func.func @_wqe_kernel(%arg0: i32, %arg1: memref<1x128xf32, #tpu.memory_space<vmem>>, %arg2: memref<32x20xf32, #tpu.memory_space<vmem>>, %arg3: memref<32x128xf32, #tpu.memory_space<vmem>>) attributes {dimension_semantics = [#tpu.dimension_semantics<parallel>], iteration_bounds = array<i64: 1>, scalar_prefetch = 0 : i64, scratch_operands = 0 : i64, tpu.core_type = #tpu.core_type<tc>, window_params = [{transform_indices = @transform_0, window_bounds = array<i64: 1, 128>}, {pipeline_mode = #tpu.pipeline_mode<synchronous>, transform_indices = @transform_1, window_bounds = array<i64: 32, 20>}, {transform_indices = @transform_2, window_bounds = array<i64: 32, 128>}]} {
    %c0 = arith.constant 0 : index
    %c0_0 = arith.constant 0 : index
    %0 = vector.load %arg1[%c0, %c0_0] : memref<1x128xf32, #tpu.memory_space<vmem>>, vector<1x128xf32>
    %1 = tpu.iota {dimensions = array<i32: 0>} : vector<20x128xi32>
    %2 = arith.sitofp %1 : vector<20x128xi32> to vector<20x128xf32>
    %cst = arith.constant 0.0526315793 : f32
    %3 = vector.broadcast %cst : f32 to vector<20x128xf32>
    %4 = arith.mulf %2, %3 : vector<20x128xf32>
    %5 = vector.broadcast %0 : vector<1x128xf32> to vector<20x128xf32>
    %6 = arith.subf %4, %5 : vector<20x128xf32>
    %7 = math.absf %6 : vector<20x128xf32>
    %cst_1 = arith.constant 9.99999993E-9 : f32
    %8 = vector.broadcast %cst_1 : f32 to vector<20x128xf32>
    %9 = arith.addf %7, %8 : vector<20x128xf32>
    %cst_2 = arith.constant 1.000000e+00 : f32
    %10 = vector.broadcast %cst_2 : f32 to vector<20x128xf32>
    %11 = arith.divf %10, %9 : vector<20x128xf32>
    %cst_3 = arith.constant dense<0xFF800000> : vector<128xf32>
    %12 = vector.multi_reduction <maximumf>, %11, %cst_3 [0] : vector<20x128xf32> to vector<128xf32>
    %13 = vector.shape_cast %12 : vector<128xf32> to vector<1x128xf32>
    %14 = vector.broadcast %13 : vector<1x128xf32> to vector<20x128xf32>
    %15 = arith.subf %11, %14 : vector<20x128xf32>
    %16 = math.exp %15 : vector<20x128xf32>
    %cst_4 = arith.constant dense<0.000000e+00> : vector<128xf32>
    %17 = vector.multi_reduction <add>, %16, %cst_4 [0] : vector<20x128xf32> to vector<128xf32>
    %18 = vector.shape_cast %17 : vector<128xf32> to vector<1x128xf32>
    %19 = tpu.reciprocal %18 {approx = true} : vector<1x128xf32> -> vector<1x128xf32>
    %20 = vector.broadcast %19 : vector<1x128xf32> to vector<20x128xf32>
    %21 = arith.mulf %16, %20 : vector<20x128xf32>
    %c0_5 = arith.constant 0 : index
    %c0_6 = arith.constant 0 : index
    %22 = vector.load %arg2[%c0_5, %c0_6] : memref<32x20xf32, #tpu.memory_space<vmem>>, vector<32x20xf32>
    %cst_7 = arith.constant dense<0.000000e+00> : vector<32x128xf32>
    %23 = tpu.matmul %22, %21, %cst_7 {dimension_numbers = #tpu.dot_dimension_numbers<[1], [0], [0], [1], [0, 0, 1, 1], [], []>} : vector<32x20xf32>, vector<20x128xf32>, vector<32x128xf32> -> vector<32x128xf32>
    %c0_8 = arith.constant 0 : index
    %c0_9 = arith.constant 0 : index
    %24 = vector.load %arg3[%c0_8, %c0_9] : memref<32x128xf32, #tpu.memory_space<vmem>>, vector<32x128xf32>
    tpu.vector_store %arg3[%c0_8, %c0_9], %23 {strides = array<i32>} : memref<32x128xf32, #tpu.memory_space<vmem>>, vector<32x128xf32>,
    return
  }
  func.func @transform_0(%arg0: i32) -> (i32, i32) {
    %c0_i32 = arith.constant 0 : i32
    %c0_i32_0 = arith.constant 0 : i32
    return %c0_i32, %arg0 : i32, i32
  }
  func.func @transform_1(%arg0: i32) -> (i32, i32) {
    %c0_i32 = arith.constant 0 : i32
    %c0_i32_0 = arith.constant 0 : i32
    %c0_i32_1 = arith.constant 0 : i32
    return %c0_i32, %c0_i32_0 : i32, i32
  }
  func.func @transform_2(%arg0: i32) -> (i32, i32) {
    %c0_i32 = arith.constant 0 : i32
    %c0_i32_0 = arith.constant 0 : i32
    return %c0_i32, %arg0 : i32, i32
  }
}

</mosaic_0001>

<bundles_post_ra>
// kernel: tpu_custom_call.1
= control target key start
LH: loop header
LB: loop body
LE: loop exit
PB: predicated region body
PF: predicated region fallthrough
CT: control target
= control target key end

     0   :  { %v13_v0 = vlaneseq  ;;  %vm80_vm0 = vcmask 162816   ;;  %s330_s0 = inlined_call_operand.vmem [shape: f32[1,128], index: 0, kind: input, shape index: {}]   ;;  %s331_s1 = inlined_call_operand.vmem [shape: f32[32,20], index: 1, kind: input, shape index: {}]   ;;  %s332_s2 = inlined_call_operand.hbm [shape: f32[32,128], index: 2, kind: output, shape index: {}]  }
   0x1   :  { %v76_v1 = vld [vmem:[%s331_s1] sm:$0xff]  ;;  %v78_v2 = vld [vmem:[%s331_s1 + $0x10] sm:$0xff] }
   0x2   :  { %220 = vmatprep.mubr.msk.f32.mxu0 %vm80_vm0, %v76_v1  ;;  %223 = vmatprep.mubr.msk.f32.mxu1 %vm80_vm0, %v78_v2 }
   0x3   :  { %7 = vsyncpa [#allocation3], 0  ;;  %v14_v3 = vshrl.u32 %v13_v0, 7  ;;  %v201_v7 = vld [vmem:[%s330_s0] ss:$0 sm:$0xff]  ;;  %vm44_vm1 = vcmask 1043456  }
   0x4   :  { %v77_v57 = vld [vmem:[%s331_s1 + $0x8] sm:$0xff]  ;;  %v79_v58 = vld [vmem:[%s331_s1 + $0x18] sm:$0xff]  ;;  %s275_s18 = smov [#allocation2]  }
   0x5   :  { %v15_v4 = vadd.s32 8, %v14_v3  ;;  %v16_v5 = vadd.s32 16, %v14_v3  ;;  %v17_v6 = vcvt.s32.f32 %v14_v3  ;;  %s190_s19 = sshll.u32 %s275_s18, 4  ;;  %s191_s19 = int_to_ptr.vmem [resolvable:$true] %s190_s19 }
   0x6   :  { %s251_s1 = scalar_lea.vmem %s191_s19, 512  ;;  %p256_p1 = scmp.lt.s32.totalorder %s191_s19, %s191_s19 }
   0x7   :  { %v18_v8 = vcvt.s32.f32 %v15_v4  ;;  %v19_v9 = vcvt.s32.f32 %v16_v5  ;;  %v20_v10 = vmul.f32 0.05263158, %v17_v6  ;;  %p252_p0 = scmp.ne.s32.totalorder %s191_s19, %s251_s1  ;;  %p257_p2 = scmp.lt.s32.totalorder %s251_s1, %s251_s1 }
   0x9   :  { %v21_v11 = vmul.f32 0.05263158, %v18_v8  ;;  %v22_v12 = vmul.f32 0.05263158, %v19_v9  ;;  %v29_v13 = vsub.f32 %v20_v10, %v201_v7  ;;  %p258_p3 = por %p257_p2, %p256_p1 }
   0xb   :  { %v30_v14 = vsub.f32 %v21_v11, %v201_v7  ;;  %v31_v15 = vsub.f32 %v22_v12, %v201_v7  ;;  %v32_v16 = vand.u32 2147483647, %v29_v13  ;;  %p259_p4 = pnand %p258_p3, %p252_p0 }
   0xd   :  { %v33_v17 = vand.u32 2147483647, %v30_v14  ;;  %v34_v18 = vand.u32 2147483647, %v31_v15  ;;  %v35_v19 = vadd.f32 1e-08, %v32_v16 }
   0xf   :  { %v36_v20 = vadd.f32 1e-08, %v33_v17  ;;  %v37_v21 = vadd.f32 1e-08, %v34_v18  ;;  %237 = vrcp.f32 %v35_v19 }
  0x11   :  { %239 = vrcp.f32 %v36_v20 }
  0x12   :  { %241 = vrcp.f32 %v37_v21 }
  0x19   :  { %v238_v22 = vpop.eup %237 }
  0x1b   :  { %v240_v23 = vpop.eup %239 }
  0x1c   :  { %v242_v24 = vpop.eup %241  ;;  %v46_v25 = vmax.f32 %v238_v22, %v240_v23 }
  0x1d   :  { %v45_v26 = vsel %vm44_vm1, %v242_v24, -inf }
  0x1e   :  { %v47_v27 = vmax.f32 %v46_v25, %v45_v26 }
  0x20   :  { %v48_v28 = vrot.slane %v47_v27, 4 }
  0x22   :  { %v49_v29 = vmax.f32 %v47_v27, %v48_v28 }
  0x24   :  { %v50_v30 = vrot.slane %v49_v29, 2 }
  0x26   :  { %v51_v31 = vmax.f32 %v49_v29, %v50_v30 }
  0x28   :  { %v52_v32 = vrot.slane %v51_v31, 1 }
  0x2a   :  { %v53_v33 = vmax.f32 %v51_v31, %v52_v32 }
  0x2c   :  { %v54_v34 = vsub.f32 %v238_v22, %v53_v33  ;;  %v55_v35 = vsub.f32 %v240_v23, %v53_v33  ;;  %v56_v36 = vsub.f32 %v242_v24, %v53_v33 }
  0x2e   :  { %v57_v37 = vmul.f32 1.442695, %v54_v34  ;;  %v59_v38 = vmul.f32 1.442695, %v55_v35  ;;  %v61_v39 = vmul.f32 1.442695, %v56_v36 }
  0x30   :  { %243 = vpow2.f32 %v57_v37 }
  0x31   :  { %245 = vpow2.f32 %v59_v38 }
  0x32   :  { %247 = vpow2.f32 %v61_v39 }
  0x3a   :  { %v244_v40 = vpop.eup %243 }
  0x3b   :  { %v246_v41 = vpop.eup %245 }
  0x3c   :  { %v248_v42 = vpop.eup %247  ;;  %v63_v43 = vadd.f32 %v246_v41, %v244_v40 }
  0x3d   :  { %v64_v44 = vsel %vm44_vm1, %v248_v42, 0.0 }
  0x3e   :  { %v65_v45 = vadd.f32 %v64_v44, %v63_v43 }
  0x40   :  { %v66_v46 = vrot.slane %v65_v45, 4 }
  0x42   :  { %v67_v47 = vadd.f32 %v66_v46, %v65_v45 }
  0x44   :  { %v68_v48 = vrot.slane %v67_v47, 2 }
  0x46   :  { %v69_v49 = vadd.f32 %v68_v48, %v67_v47 }
  0x48   :  { %v70_v50 = vrot.slane %v69_v49, 1 }
  0x4a   :  { %v71_v51 = vadd.f32 %v70_v50, %v69_v49 }
  0x4c   :  { %249 = vrcp.f32 %v71_v51 }
  0x56   :  { %v250_v52 = vpop.eup %249 }
  0x57   :  { %v73_v53 = vmul.f32 %v250_v52, %v244_v40  ;;  %v74_v54 = vmul.f32 %v250_v52, %v246_v41  ;;  %v75_v56 = vmul.f32 %v250_v52, %v248_v42 }
  0x59   :  { %v226_v55 = vpack.c.bf16 %v74_v54, %v73_v53 }
  0x5b   :  { %227 = vmatprep.subr.bf16.mxu0 %v226_v55  ;;  %230 = vmatprep.subr.bf16.mxu1 %v226_v55 }
  0x5c   :  { %229 = vmatpush3.bf16.msra.mxu0 %v226_v55  ;;  %232 = vmatpush3.bf16.msra.mxu1 %v226_v55 }
  0x5d   :  { %218 = vmatprep.subr.msk.mxu0 %vm44_vm1, %v75_v56  ;;  %231 = vmatprep.subr.msk.mxu1 %vm44_vm1, %v75_v56 }
  0x60   :  { %219 = vmatpush3.msk.msra.mxu0 %vm44_vm1, %v75_v56  ;;  %233 = vmatpush3.msk.msra.mxu1 %vm44_vm1, %v75_v56 }
  0x61   :  { %221 = vmatmul.mubr.msk.f32.vlgmr.msra.gmra.mrb[0].mxu0 %vm80_vm0, %v77_v57  ;;  %224 = vmatmul.mubr.msk.f32.vlgmr.msra.gmra.mrb[0].mxu1 %vm80_vm0, %v79_v58 }
 0x134   :  { %v222_v59 = vpop.f32.mrb[0].mxu0  ;;  %v225_v60 = vpop.f32.mrb[0].mxu1 }
 0x135   :  { %182 = vst [vmem:[#allocation2 + $0x8] sm:$0xff] %v222_v59  ;;  %184 = vst [vmem:[#allocation2 + $0x18] sm:$0xff] %v225_v60  ;;  %v162_v61 = vpop.f32.mrb[1].mxu0  ;;  %v172_v62 = vpop.f32.mrb[1].mxu1 }
 0x136   :  { %181 = vst [vmem:[#allocation2] sm:$0xff] %v162_v61  ;;  %183 = vst [vmem:[#allocation2 + $0x10] sm:$0xff] %v172_v62 }
 0x137   :  { %262 = shalt.err (!%p259_p4)
}
 0x138   :  { %s263_s22 = scalar_lea.hbm %s332_s2, 512 }
 0x139   :  { %p264_p5 = scmp.ne.s32.totalorder %s332_s2, %s263_s22  ;;  %p267_p6 = scmp.lt.u32.totalorder %s263_s22, %s332_s2 }
 0x13b   :  { %p269_p7 = pnand %p267_p6, %p264_p5 }
 0x13d   :  { %272 = shalt.err (!%p269_p7)
}
 0x13e   :  { %s276_s27 = smov 128   ;;  %s277_s28 = smov 8  }
 0x13f   :  { %196 = dma.vmem_to_hbm [thread:$0]  %s191_s19, 512, %s332_s2, [#allocation3], %s276_s27, %s276_s27, %s277_s28  }
 0x140   :  { %273 = dma.done.wait [#allocation3], 512  }
 0x141   :  { %274 = vsyncadd [#allocation3], 4294966784 }
 0x142   :  { %200 = vsyncpa [#allocation3], 1 }

</bundles_post_ra>
